<compile_context>
chip_gen: v7x
topology: tpu7x:2x2x1
jax: 0.10.0
libtpu: 0.0.40
codegen_flags: <defaults>
</compile_context>

<pallas_src>
import functools

import jax
import jax.numpy as jnp
from jax import lax
from jax.experimental import pallas as pl
from jax.experimental.pallas import tpu as pltpu


# ----------------------------------------------------------------------------
# Pallas kernel: tiled matmul (bf16 in, f32 scratch accumulator) + bias + ReLU.
# ----------------------------------------------------------------------------
def _fused_matmul_kernel(x_ref, w_ref, b_ref, o_ref, acc_ref, *, apply_relu):
    k = pl.program_id(2)

    @pl.when(k == 0)
    def _():
        acc_ref[...] = jnp.zeros_like(acc_ref)

    acc_ref[...] += jnp.dot(
        x_ref[...], w_ref[...], preferred_element_type=jnp.float32
    )

    @pl.when(k == pl.num_programs(2) - 1)
    def _():
        y = acc_ref[...] + b_ref[...]
        if apply_relu:
            y = jnp.maximum(y, 0.0)
        o_ref[...] = y.astype(o_ref.dtype)


# ----------------------------------------------------------------------------
# Tile selection (VMEM-budget aware, TensorCore-count aware)
# ----------------------------------------------------------------------------
def _num_tensorcores():
    try:
        d = jax.devices()[0]
        nc = getattr(d, "num_cores", None)
        if nc:
            return int(nc)
        kind = (getattr(d, "device_kind", "") or "").lower()
        if "v7" in kind:
            return 2
    except Exception:
        pass
    return 1


def _pick(dim, candidates):
    for c in candidates:
        if dim % c == 0:
            return c
    return dim


_VMEM_TILE_BUDGET = 36 * 1024 * 1024  # keeps headroom under the 48 MiB limit


def _choose_tiles(M, K, N, out_bytes, n_cores):
    tm = _pick(M, (256, 128, 64, 32, 16))
    tn = _pick(N, (512, 256, 128))
    # v7x has 2 TensorCores: guarantee >=2 tiles on a "parallel" axis so both
    # cores get work.  On single-TC v5e/v6e keep the grid as small as possible
    # (per-step overhead dominates these tiny-M layers).
    if n_cores >= 2 and (M // tm) * (N // tn) < 2:
        while N // tn < 2 and tn > 128 and tn % 2 == 0:
            tn //= 2
        if (M // tm) * (N // tn) < 2 and tm >= 32:
            tm //= 2

    def fits(tk):
        return (
            2 * tm * tk * 2            # double-buffered bf16 X tile
            + 2 * tk * tn * 2          # double-buffered bf16 W tile
            + 2 * tm * tn * out_bytes  # double-buffered output tile
            + tm * tn * 4              # f32 accumulator scratch
            + 2 * tn * 4               # bias
        ) <= _VMEM_TILE_BUDGET

    tk = K  # full-K reduction (single K step) whenever it fits the budget
    if not fits(tk):
        for c in (4096, 2048, 1024, 512, 256, 128):
            if K % c == 0 and fits(c):
                tk = c
                break
    return tm, tk, tn


# ----------------------------------------------------------------------------
# Wrapper: y = maybe_relu(x @ w + bias); bf16 operands, f32 MXU accumulation.
# ----------------------------------------------------------------------------
def fused_matmul_bias_relu(x, w, bias, *, relu, out_dtype=jnp.bfloat16):
    M, K = x.shape
    K2, N = w.shape
    assert K == K2

    # Pad M to a sublane-friendly multiple of 16 (bf16 packs 2 rows / sublane).
    Mp = max(16, -(-M // 16) * 16)
    if Mp != M:
        x = jnp.pad(x, ((0, Mp - M), (0, 0)))

    out_bytes = jnp.dtype(out_dtype).itemsize
    tm, tk, tn = _choose_tiles(Mp, K, N, out_bytes, _num_tensorcores())
    grid = (Mp // tm, N // tn, K // tk)

    bias2 = bias.reshape(1, N).astype(jnp.float32)

    kernel = functools.partial(_fused_matmul_kernel, apply_relu=relu)
    out = pl.pallas_call(
        kernel,
        out_shape=jax.ShapeDtypeStruct((Mp, N), out_dtype),
        grid_spec=pltpu.PrefetchScalarGridSpec(
            num_scalar_prefetch=0,
            grid=grid,
            # NOTE: with K innermost, the X row of K-tiles is re-streamed
            # N//tn times; fine here (M <= 128).  For large-batch deployment,
            # swap i/j so the smaller operand is the one re-read.
            in_specs=[
                pl.BlockSpec((tm, tk), lambda i, j, k: (i, k)),
                pl.BlockSpec((tk, tn), lambda i, j, k: (k, j)),
                pl.BlockSpec((1, tn), lambda i, j, k: (0, j)),
            ],
            out_specs=pl.BlockSpec((tm, tn), lambda i, j, k: (i, j)),
            scratch_shapes=[pltpu.VMEM((tm, tn), jnp.float32)],
        ),
        compiler_params=pltpu.CompilerParams(
            dimension_semantics=("parallel", "parallel", "arbitrary"),
            vmem_limit_bytes=48 * 1024 * 1024,
        ),
    )(x, w, bias2)
    return out[:M] if Mp != M else out


# ----------------------------------------------------------------------------
# Plain-JAX glue: im2col on NHWC (channel-last => no transpose; column order is
# (ki, kj, c), matching the reshaped weights).
# ----------------------------------------------------------------------------
def im2col_nhwc(x_nhwc, k, stride, pad):
    # TODO(synk): fuse this patch extraction into the matmul kernel (fold k*k
    # into the K grid axis) to avoid materializing the 4x-sized patch tensor.
    B, H, W, C = x_nhwc.shape
    xp = jnp.pad(x_nhwc, ((0, 0), (pad, pad), (pad, pad), (0, 0)))
    Ho = (H + 2 * pad - k) // stride + 1
    Wo = (W + 2 * pad - k) // stride + 1
    cols = [
        xp[:, ki: ki + stride * Ho: stride, kj: kj + stride * Wo: stride, :]
        for ki in range(k) for kj in range(k)
    ]
    col = jnp.concatenate(cols, axis=-1)          # (B, Ho, Wo, k*k*C)
    return col.reshape(B * Ho * Wo, k * k * C), Ho, Wo


# ----------------------------------------------------------------------------
# Encoder forward (NCHW in, NHWC internally, bf16 between layers)
# ----------------------------------------------------------------------------
def encoder_forward(img, params, *, stride=2, pad=1):
    B = img.shape[0]
    x = img.transpose(0, 2, 3, 1).astype(jnp.bfloat16)     # NCHW -> NHWC once
    for (w, scale, bias) in params["conv"]:
        Cout, Cin, kk, _ = w.shape
        cols, Ho, Wo = im2col_nhwc(x, kk, stride, pad)      # bf16 patches
        # (Cout,Cin,kh,kw) -> (kh,kw,Cin,Cout) flat matches the (ki,kj,c) column
        # order; fold the BN scale into the weights before the bf16 cast.
        wm = w.transpose(2, 3, 1, 0).reshape(kk * kk * Cin, Cout)
        wm = (wm * scale[None, :]).astype(jnp.bfloat16)
        y = fused_matmul_bias_relu(cols, wm, bias, relu=True)   # (M, Cout) bf16
        x = y.reshape(B, Ho, Wo, Cout)                           # stays NHWC bf16

    # out.squeeze(): final spatial is 1x1 -> (B, 1024)
    feat = x.reshape(B, -1)

    # Linear(1024, latent_dim): pad output to 128 lanes for lane-dense stores.
    fc_w, fc_b = params["fc_w"], params["fc_b"]
    latent = fc_w.shape[0]
    n_pad = 128
    wp = jnp.zeros((fc_w.shape[1], n_pad), jnp.float32).at[:, :latent].set(fc_w.T)
    bp = jnp.zeros((n_pad,), jnp.float32).at[:latent].set(fc_b)
    out = fused_matmul_bias_relu(feat, wp.astype(jnp.bfloat16), bp,
                                 relu=False, out_dtype=jnp.float32)
    return out[:, :latent]


# ----------------------------------------------------------------------------
# Deterministic parameter init (shapes from Encoder.__init__)
# ----------------------------------------------------------------------------
def init_params(key, channels=1, latent_dim=8, k=4):
    widths = [channels, 128, 256, 512, 1024]
    bn_flags = [False, True, True, True]
    eps = 1e-5
    conv = []
    for i in range(4):
        cin, cout = widths[i], widths[i + 1]
        key, k1, k2, k3, k4, k5 = jax.random.split(key, 6)
        w = 0.05 * jax.random.normal(k1, (cout, cin, k, k), jnp.float32)
        if bn_flags[i]:
            gamma = 1.0 + 0.1 * jax.random.normal(k2, (cout,), jnp.float32)
            beta = 0.1 * jax.random.normal(k3, (cout,), jnp.float32)
            rmean = 0.1 * jax.random.normal(k4, (cout,), jnp.float32)
            rvar = 0.5 + jax.random.uniform(k5, (cout,), jnp.float32)
            scale = gamma / jnp.sqrt(rvar + eps)
            bias = beta - rmean * scale
        else:
            scale = jnp.ones((cout,), jnp.float32)
            bias = jnp.zeros((cout,), jnp.float32)
        conv.append((w, scale, bias))
    key, k1, k2 = jax.random.split(key, 3)
    fc_w = 0.05 * jax.random.normal(k1, (latent_dim, 1024), jnp.float32)
    fc_b = 0.05 * jax.random.normal(k2, (latent_dim,), jnp.float32)
    return {"conv": conv, "fc_w": fc_w, "fc_b": fc_b}


# ----------------------------------------------------------------------------
# Pure-JAX references.
#   match_kernel_precision=True mirrors the kernel numerics (bf16 operands, f32
#   accumulation, scale folded into weights, bf16 inter-layer activations) so
#   the comparison isolates the Pallas machinery.  False = pure f32 semantics.
# ----------------------------------------------------------------------------
def reference_forward(img, params, *, match_kernel_precision=False):
    dn = ("NCHW", "OIHW", "NCHW")
    x = img.astype(jnp.bfloat16) if match_kernel_precision else img
    for (w, scale, bias) in params["conv"]:
        if match_kernel_precision:
            wf = (w * scale[:, None, None, None]).astype(jnp.bfloat16)
            y = lax.conv_general_dilated(
                x, wf, window_strides=(2, 2), padding=[(1, 1), (1, 1)],
                dimension_numbers=dn, preferred_element_type=jnp.float32)
            y = y + bias[None, :, None, None]
            x = jnp.maximum(y, 0.0).astype(jnp.bfloat16)
        else:
            y = lax.conv_general_dilated(
                x, w, window_strides=(2, 2), padding=[(1, 1), (1, 1)],
                dimension_numbers=dn)
            y = y * scale[None, :, None, None] + bias[None, :, None, None]
            x = jnp.maximum(y, 0.0)
    feat = x.reshape(x.shape[0], -1)  # final spatial is 1x1
    if match_kernel_precision:
        return jnp.dot(feat, params["fc_w"].T.astype(jnp.bfloat16),
                       preferred_element_type=jnp.float32) + params["fc_b"]
    return feat @ params["fc_w"].T + params["fc_b"]


if __name__ == "__main__":
    key = jax.random.PRNGKey(0)
    key, pkey, xkey = jax.random.split(key, 3)

    # batch=2, channels=1, img_size=16: after four stride-2 convs the spatial
    # size is 1x1, matching the module's squeeze() + Linear(1024, latent_dim).
    B, C, IMG = 2, 1, 16
    latent_dim = 8

    params = init_params(pkey, channels=C, latent_dim=latent_dim)
    img = jax.random.normal(xkey, (B, C, IMG, IMG), jnp.float32)

    out = jax.block_until_ready(encoder_forward(img, params))
    assert out.shape == (B, latent_dim), out.shape

    # (1) Precision-matched reference: validates the Pallas kernel machinery.
    ref_bf16 = jax.block_until_ready(
        reference_forward(img, params, match_kernel_precision=True))
    err_m = float(jnp.max(jnp.abs(out - ref_bf16)))
    assert jnp.allclose(out, ref_bf16, rtol=2e-2, atol=2e-2), (
        "max abs err vs matched ref %f" % err_m)

    # (2) Pure-f32 reference: documents the intentional bf16 precision tradeoff
    #     (bf16 operands/activations across 5 layers => ~1e-2 abs deviation).
    ref_f32 = jax.block_until_ready(
        reference_forward(img, params, match_kernel_precision=False))
    err_f = float(jnp.max(jnp.abs(out - ref_f32)))
    assert jnp.allclose(out, ref_f32, rtol=1e-1, atol=1e-1), (
        "max abs err vs f32 ref %f" % err_f)

    print("KERNEL_OK")
</pallas_src>

<mosaic_0001>
module attributes {stable_mosaic.version = 11 : i64} {
  func.func @_fused_matmul_kernel(%arg0: i32, %arg1: i32, %arg2: i32, %arg3: memref<128x16xbf16, #tpu.memory_space<vmem>>, %arg4: memref<16x128xbf16, #tpu.memory_space<vmem>>, %arg5: memref<1x128xf32, #tpu.memory_space<vmem>>, %arg6: memref<128x128xbf16, #tpu.memory_space<vmem>>, %arg7: memref<128x128xf32, #tpu.memory_space<vmem>>) attributes {dimension_semantics = [#tpu.dimension_semantics<parallel>, #tpu.dimension_semantics<parallel>, #tpu.dimension_semantics<arbitrary>], iteration_bounds = array<i64: 1, 1, 1>, scalar_prefetch = 0 : i64, scratch_operands = 1 : i64, tpu.core_type = #tpu.core_type<tc>, window_params = [{transform_indices = @transform_0, window_bounds = array<i64: 128, 16>}, {transform_indices = @transform_1, window_bounds = array<i64: 16, 128>}, {transform_indices = @transform_2, window_bounds = array<i64: 1, 128>}, {transform_indices = @transform_3, window_bounds = array<i64: 128, 128>}]} {
    %c0_i32 = arith.constant 0 : i32
    %0 = arith.cmpi eq, %arg2, %c0_i32 : i32
    %1 = arith.extui %0 : i1 to i32
    %c0_i32_0 = arith.constant 0 : i32
    %2 = arith.cmpi ne, %1, %c0_i32_0 : i32
    scf.if %2 {
      %cst_10 = arith.constant 0.000000e+00 : f32
      %12 = vector.broadcast %cst_10 : f32 to vector<128x128xf32>
      %c0_11 = arith.constant 0 : index
      %c0_12 = arith.constant 0 : index
      %13 = vector.load %arg7[%c0_11, %c0_12] : memref<128x128xf32, #tpu.memory_space<vmem>>, vector<128x128xf32>
      tpu.vector_store %arg7[%c0_11, %c0_12], %12 {strides = array<i32>} : memref<128x128xf32, #tpu.memory_space<vmem>>, vector<128x128xf32>,
    } else {
    }
    %c0 = arith.constant 0 : index
    %c0_1 = arith.constant 0 : index
    %3 = vector.load %arg7[%c0, %c0_1] : memref<128x128xf32, #tpu.memory_space<vmem>>, vector<128x128xf32>
    %c0_2 = arith.constant 0 : index
    %c0_3 = arith.constant 0 : index
    %4 = vector.load %arg3[%c0_2, %c0_3] : memref<128x16xbf16, #tpu.memory_space<vmem>>, vector<128x16xbf16>
    %c0_4 = arith.constant 0 : index
    %c0_5 = arith.constant 0 : index
    %5 = vector.load %arg4[%c0_4, %c0_5] : memref<16x128xbf16, #tpu.memory_space<vmem>>, vector<16x128xbf16>
    %cst = arith.constant dense<0.000000e+00> : vector<128x128xf32>
    %6 = tpu.matmul %4, %5, %cst {dimension_numbers = #tpu.dot_dimension_numbers<[1], [0], [0], [1], [0, 0, 1, 1], [], []>} : vector<128x16xbf16>, vector<16x128xbf16>, vector<128x128xf32> -> vector<128x128xf32>
    %7 = arith.addf %3, %6 : vector<128x128xf32>
    %c0_6 = arith.constant 0 : index
    %c0_7 = arith.constant 0 : index
    %8 = vector.load %arg7[%c0_6, %c0_7] : memref<128x128xf32, #tpu.memory_space<vmem>>, vector<128x128xf32>
    tpu.vector_store %arg7[%c0_6, %c0_7], %7 {strides = array<i32>} : memref<128x128xf32, #tpu.memory_space<vmem>>, vector<128x128xf32>,
    %c0_i32_8 = arith.constant 0 : i32
    %9 = arith.cmpi eq, %arg2, %c0_i32_8 : i32
    %10 = arith.extui %9 : i1 to i32
    %c0_i32_9 = arith.constant 0 : i32
    %11 = arith.cmpi ne, %10, %c0_i32_9 : i32
    scf.if %11 {
      %c0_10 = arith.constant 0 : index
      %c0_11 = arith.constant 0 : index
      %12 = vector.load %arg7[%c0_10, %c0_11] : memref<128x128xf32, #tpu.memory_space<vmem>>, vector<128x128xf32>
      %c0_12 = arith.constant 0 : index
      %c0_13 = arith.constant 0 : index
      %13 = vector.load %arg5[%c0_12, %c0_13] : memref<1x128xf32, #tpu.memory_space<vmem>>, vector<1x128xf32>
      %14 = vector.broadcast %13 : vector<1x128xf32> to vector<128x128xf32>
      %15 = arith.addf %12, %14 : vector<128x128xf32>
      %cst_14 = arith.constant 0.000000e+00 : f32
      %16 = vector.broadcast %cst_14 : f32 to vector<128x128xf32>
      %17 = arith.maximumf %15, %16 : vector<128x128xf32>
      %18 = arith.truncf %17 : vector<128x128xf32> to vector<128x128xbf16>
      %c0_15 = arith.constant 0 : index
      %c0_16 = arith.constant 0 : index
      %19 = vector.load %arg6[%c0_15, %c0_16] : memref<128x128xbf16, #tpu.memory_space<vmem>>, vector<128x128xbf16>
      tpu.vector_store %arg6[%c0_15, %c0_16], %18 {strides = array<i32>} : memref<128x128xbf16, #tpu.memory_space<vmem>>, vector<128x128xbf16>,
    } else {
    }
    return
  }
  func.func @transform_0(%arg0: i32, %arg1: i32, %arg2: i32) -> (i32, i32) {
    %c0_i32 = arith.constant 0 : i32
    return %arg0, %arg2 : i32, i32
  }
  func.func @transform_1(%arg0: i32, %arg1: i32, %arg2: i32) -> (i32, i32) {
    %c0_i32 = arith.constant 0 : i32
    return %arg2, %arg1 : i32, i32
  }
  func.func @transform_2(%arg0: i32, %arg1: i32, %arg2: i32) -> (i32, i32) {
    %c0_i32 = arith.constant 0 : i32
    %c0_i32_0 = arith.constant 0 : i32
    return %c0_i32, %arg1 : i32, i32
  }
  func.func @transform_3(%arg0: i32, %arg1: i32, %arg2: i32) -> (i32, i32) {
    %c0_i32 = arith.constant 0 : i32
    return %arg0, %arg1 : i32, i32
  }
}

</mosaic_0001>

<bundles_post_ra>
// kernel: tpu_custom_call.1
= control target key start
LH: loop header
LB: loop body
LE: loop exit
PB: predicated region body
PF: predicated region fallthrough
CT: control target
= control target key end

     0   :  { %vm116_vm0 = vcmask 130048   ;;  %s659_s0 = inlined_call_operand.vmem [shape: bf16[128,16], index: 0, kind: input, shape index: {}]   ;;  %s660_s1 = inlined_call_operand.vmem [shape: bf16[16,128], index: 1, kind: input, shape index: {}]   ;;  %s661_s2 = inlined_call_operand.vmem [shape: f32[1,128], index: 2, kind: input, shape index: {}]   ;;  %s662_s3 = inlined_call_operand.hbm [shape: bf16[128,128], index: 3, kind: output, shape index: {}]  }
   0x1   :  { %v553_v0 = vld [vmem:[%s660_s1] sm:$0xff]   ;;  %v556_v3 = vld [vmem:[%s659_s0 + $0x8] sm:$0xff]   ;;  %v558_v5 = vld [vmem:[%s659_s0 + $0x10] sm:$0xff]  }
   0x2   :  { %v554_v1 = vld [vmem:[%s659_s0] sm:$0xff]   ;;  %530 = vmatprep.subr.bf16.mxu0 %v553_v0  ;;  %548 = vmatprep.subr.bf16.mxu1 %v553_v0  ;;  %v557_v4 = vld [vmem:[%s659_s0 + $0x28] sm:$0xff]   ;;  %v559_v6 = vld [vmem:[%s659_s0 + $0x30] sm:$0xff]  }
   0x3   :  { %v555_v2 = vld [vmem:[%s659_s0 + $0x20] sm:$0xff]   ;;  %531 = vmatpush3.bf16.msra.mxu0 %v553_v0  ;;  %549 = vmatpush3.bf16.msra.mxu1 %v553_v0 }
   0x4   :  { %532 = vmatprep.mubr.msk.bf16.mxu0 %vm116_vm0, %v554_v1  ;;  %540 = vmatprep.mubr.msk.bf16.mxu1 %vm116_vm0, %v555_v2 }
   0x6   :  { %533 = vmatmul.mubr.msk.bf16.vlgmr.msra.gmra.mrb[0].mxu0 %vm116_vm0, %v556_v3  ;;  %541 = vmatmul.mubr.msk.bf16.vlgmr.msra.gmra.mrb[0].mxu1 %vm116_vm0, %v557_v4 }
   0x7   :  { %536 = vmatprep.mubr.msk.bf16.mxu0 %vm116_vm0, %v558_v5  ;;  %544 = vmatprep.mubr.msk.bf16.mxu1 %vm116_vm0, %v559_v6 }
   0x8   :  { %8 = vsyncpa [#allocation4], 0  ;;  %v560_v7 = vld [vmem:[%s659_s0 + $0x18] sm:$0xff]   ;;  %v441_v9 = vld [vmem:[%s661_s2] ss:$0 sm:$0xff] }
   0x9   :  { %v561_v8 = vld [vmem:[%s659_s0 + $0x38] sm:$0xff]   ;;  %s586_s0 = smov [#allocation3]  }
   0xa   :  { %s413_s2 = sshll.u32 %s586_s0, 4  ;;  %s414_s2 = int_to_ptr.vmem [resolvable:$true] %s413_s2 }
   0xb   :  { %s562_s4 = scalar_lea.vmem %s414_s2, 1024  ;;  %p567_p1 = scmp.lt.s32.totalorder %s414_s2, %s414_s2 }
   0xc   :  { %p563_p0 = scmp.ne.s32.totalorder %s414_s2, %s562_s4  ;;  %p568_p2 = scmp.lt.s32.totalorder %s562_s4, %s562_s4 }
   0xe   :  { %537 = vmatmul.mubr.msk.bf16.gmra.mrb[4].mxu0 %vm116_vm0, %v560_v7  ;;  %545 = vmatmul.mubr.msk.bf16.gmra.mrb[4].mxu1 %vm116_vm0, %v561_v8  ;;  %p569_p3 = por %p568_p2, %p567_p1 }
  0x10   :  { %p570_p4 = pnand %p569_p3, %p563_p0 }
  0xd9   :  { %v534_v10 = vpop.f32.mrb[0].mxu0  ;;  %v542_v11 = vpop.f32.mrb[0].mxu1 }
  0xda   :  { %v298_v12 = vadd.f32 %v534_v10, %v441_v9  ;;  %v306_v13 = vadd.f32 %v542_v11, %v441_v9  ;;  %v175_v14 = vpop.f32.mrb[1].mxu0  ;;  %v207_v15 = vpop.f32.mrb[1].mxu1 }
  0xdb   :  { %v296_v16 = vadd.f32 %v441_v9, %v175_v14  ;;  %v304_v17 = vadd.f32 %v441_v9, %v207_v15  ;;  %v535_v18 = vpop.f32.mrb[2].mxu0  ;;  %v543_v19 = vpop.f32.mrb[2].mxu1 }
  0xdc   :  { %v299_v20 = vadd.f32 %v535_v18, %v441_v9  ;;  %v307_v21 = vadd.f32 %v543_v19, %v441_v9  ;;  %v178_v22 = vpop.f32.mrb[3].mxu0  ;;  %v210_v23 = vpop.f32.mrb[3].mxu1  ;;  %v314_v26 = vmax.f32 %v298_v12, 0.0  ;;  %v322_v27 = vmax.f32 %v306_v13, 0.0 }
  0xdd   :  { %v297_v24 = vadd.f32 %v441_v9, %v178_v22  ;;  %v305_v25 = vadd.f32 %v441_v9, %v210_v23  ;;  %v312_v30 = vmax.f32 %v296_v16, 0.0  ;;  %v320_v31 = vmax.f32 %v304_v17, 0.0 }
  0xde   :  { %v315_v28 = vmax.f32 %v299_v20, 0.0  ;;  %v323_v29 = vmax.f32 %v307_v21, 0.0 }
  0xdf   :  { %v313_v32 = vmax.f32 %v297_v24, 0.0  ;;  %v321_v33 = vmax.f32 %v305_v25, 0.0 }
  0xe0   :  { %v482_v34 = vpack.c.bf16 %v315_v28, %v314_v26  ;;  %v502_v35 = vpack.c.bf16 %v323_v29, %v322_v27 }
  0xe1   :  { %v477_v36 = vpack.c.bf16 %v313_v32, %v312_v30  ;;  %v497_v37 = vpack.c.bf16 %v321_v33, %v320_v31  ;;  %v538_v38 = vpop.f32.mrb[4].mxu0  ;;  %v546_v39 = vpop.f32.mrb[4].mxu1 }
  0xe2   :  { %514 = vst [vmem:[#allocation3 + $0x8] sm:$0xff] %v482_v34   ;;  %518 = vst [vmem:[#allocation3 + $0x28] sm:$0xff] %v502_v35   ;;  %v302_v40 = vadd.f32 %v538_v38, %v441_v9  ;;  %v310_v41 = vadd.f32 %v546_v39, %v441_v9  ;;  %v191_v42 = vpop.f32.mrb[5].mxu0  ;;  %v223_v43 = vpop.f32.mrb[5].mxu1 }
  0xe3   :  { %478 = vst [vmem:[#allocation3] sm:$0xff] %v477_v36   ;;  %517 = vst [vmem:[#allocation3 + $0x20] sm:$0xff] %v497_v37   ;;  %v300_v44 = vadd.f32 %v441_v9, %v191_v42  ;;  %v308_v45 = vadd.f32 %v441_v9, %v223_v43  ;;  %v539_v46 = vpop.f32.mrb[6].mxu0  ;;  %v547_v47 = vpop.f32.mrb[6].mxu1 }
  0xe4   :  { %v303_v48 = vadd.f32 %v539_v46, %v441_v9  ;;  %v311_v49 = vadd.f32 %v547_v47, %v441_v9  ;;  %v194_v50 = vpop.f32.mrb[7].mxu0  ;;  %v226_v51 = vpop.f32.mrb[7].mxu1  ;;  %v318_v54 = vmax.f32 %v302_v40, 0.0  ;;  %v326_v55 = vmax.f32 %v310_v41, 0.0 }
  0xe5   :  { %v301_v52 = vadd.f32 %v441_v9, %v194_v50  ;;  %v309_v53 = vadd.f32 %v441_v9, %v226_v51  ;;  %v316_v58 = vmax.f32 %v300_v44, 0.0  ;;  %v324_v59 = vmax.f32 %v308_v45, 0.0 }
  0xe6   :  { %v319_v56 = vmax.f32 %v303_v48, 0.0  ;;  %v327_v57 = vmax.f32 %v311_v49, 0.0 }
  0xe7   :  { %v317_v60 = vmax.f32 %v301_v52, 0.0  ;;  %v325_v61 = vmax.f32 %v309_v53, 0.0 }
  0xe8   :  { %v492_v62 = vpack.c.bf16 %v319_v56, %v318_v54  ;;  %v512_v63 = vpack.c.bf16 %v327_v57, %v326_v55 }
  0xe9   :  { %v487_v0 = vpack.c.bf16 %v317_v60, %v316_v58  ;;  %v507_v1 = vpack.c.bf16 %v325_v61, %v324_v59 }
  0xea   :  { %516 = vst [vmem:[#allocation3 + $0x18] sm:$0xff] %v492_v62   ;;  %520 = vst [vmem:[#allocation3 + $0x38] sm:$0xff] %v512_v63  }
  0xeb   :  { %515 = vst [vmem:[#allocation3 + $0x10] sm:$0xff] %v487_v0   ;;  %519 = vst [vmem:[#allocation3 + $0x30] sm:$0xff] %v507_v1  }
  0xec   :  { %573 = shalt.err (!%p570_p4)
}
  0xed   :  { %s574_s7 = scalar_lea.hbm %s662_s3, 1024 }
  0xee   :  { %p575_p5 = scmp.ne.s32.totalorder %s662_s3, %s574_s7  ;;  %p578_p6 = scmp.lt.u32.totalorder %s574_s7, %s662_s3 }
  0xf0   :  { %p580_p7 = pnand %p578_p6, %p575_p5 }
  0xf2   :  { %583 = shalt.err (!%p580_p7)
}
  0xf3   :  { %s587_s12 = smov 64   ;;  %s588_s13 = smov 4  }
  0xf4   :  { %419 = dma.vmem_to_hbm [thread:$0]  %s414_s2, 1024, %s662_s3, [#allocation4], %s587_s12, %s587_s12, %s588_s13  }
  0xf5   :  { %584 = dma.done.wait [#allocation4], 1024  }
  0xf6   :  { %585 = vsyncadd [#allocation4], 4294966272 }
  0xf7   :  { %423 = vsyncpa [#allocation4], 1 }

</bundles_post_ra>
